<compile_context>
chip_gen: v5e
topology: v5e:2x2
jax: 0.10.0
libtpu: 0.0.40
codegen_flags: <defaults>
</compile_context>

<pallas_src>
from functools import partial

import jax
import jax.numpy as jnp
from jax.experimental import pallas as pl
from jax.experimental.pallas import tpu as pltpu

NEG_SLOPE = 0.01  # torch LeakyReLU default


def _leaky_relu(x):
    # identical to where(x>0, x, slope*x) for 0 < slope < 1
    return jnp.maximum(x, NEG_SLOPE * x)


# ---------------------------------------------------------------------------
# Fused kernel: classifier + all experts in two MXU dots, one 128-wide store.
# ---------------------------------------------------------------------------
def moe_kernel(x_ref, w1_ref, b1_ref, w2_ref, b2_ref, out_ref, *, n_experts, eo):
    x = x_ref[...].astype(jnp.bfloat16)                                  # (B, D)

    # Layer 1 (classifier hidden | expert hiddens) in one dot, f32 accumulate.
    h = jnp.dot(x, w1_ref[...], preferred_element_type=jnp.float32) + b1_ref[...]
    h = _leaky_relu(h)                                                    # (B, H+E*H) f32

    # Layer 2: block-diagonal fused weight, lane-padded to 128 output cols.
    z = (jnp.dot(h.astype(jnp.bfloat16), w2_ref[...],
                 preferred_element_type=jnp.float32) + b2_ref[...])       # (B, 128) f32

    # Softmax over the E classifier-logit columns only (cols [eo, eo+E)),
    # done full-width with a lane mask so the final store stays unmasked.
    col = jax.lax.broadcasted_iota(jnp.int32, z.shape, 1)
    is_p = (col >= eo) & (col < eo + n_experts)
    masked = jnp.where(is_p, z, -jnp.inf)
    m = jnp.max(masked, axis=-1, keepdims=True)
    e = jnp.exp(masked - m)                       # non-logit cols -> exp(-inf) = 0
    s = jnp.sum(e, axis=-1, keepdims=True)
    p_full = e / s                                # exact divide: rows sum to 1

    out_ref[...] = jnp.where(is_p, p_full, z)     # one (B,128) full-vreg store


# ---------------------------------------------------------------------------
# Parameter packing (done once, outside the kernel).
# ---------------------------------------------------------------------------
def pack_params(clus_params, expert_params, lane_pad=128):
    cw1, cb1, cw2, cb2 = clus_params              # (D,H) (1,H) (H,E) (1,E)
    ew1, eb1, ew2, eb2 = expert_params            # (E,D,H) (E,1,H) (E,H,O) (E,1,O)
    E, D, H = ew1.shape
    O = ew2.shape[2]
    EH, EO = E * H, E * O
    Hf = H + EH                                   # fused hidden width
    Wout = max(lane_pad, EO + E)                  # lane-padded output width

    # Layer 1 fused: cols [0,H) = classifier, cols [H+e*H, H+(e+1)*H) = expert e.
    w1_exp = jnp.transpose(ew1, (1, 0, 2)).reshape(D, EH)
    w1_f = jnp.concatenate([cw1, w1_exp], axis=1)                  # (D, Hf)
    b1_f = jnp.concatenate([cb1, eb1.reshape(1, EH)], axis=1)      # (1, Hf)

    # Layer 2 fused block-diagonal, built directly (no O(E^2) dense intermediate).
    w2_f = jnp.zeros((Hf, Wout), jnp.float32)
    w2_f = w2_f.at[:H, EO:EO + E].set(cw2)                         # classifier block
    for e in range(E):                                             # expert blocks
        w2_f = w2_f.at[H + e * H: H + (e + 1) * H, e * O:(e + 1) * O].set(ew2[e])
    b2_f = jnp.zeros((1, Wout), jnp.float32)
    b2_f = b2_f.at[0, :EO].set(eb2.reshape(EO))
    b2_f = b2_f.at[0, EO:EO + E].set(cb2[0])

    packed = (w1_f.astype(jnp.bfloat16), b1_f,
              w2_f.astype(jnp.bfloat16), b2_f)
    return packed, (E, O, Wout)


@partial(jax.jit, static_argnums=(2, 3, 4))
def _moe_call(x, packed, E, O, Wout):
    w1f, b1f, w2f, b2f = packed
    B = x.shape[0]
    vmem = lambda: pl.BlockSpec(memory_space=pltpu.MemorySpace.VMEM)
    slab = pl.pallas_call(
        partial(moe_kernel, n_experts=E, eo=E * O),
        out_shape=jax.ShapeDtypeStruct((B, Wout), jnp.float32),
        in_specs=[vmem() for _ in range(5)],
        out_specs=vmem(),
    )(x, w1f, b1f, w2f, b2f)
    return slab


def moe_forward(x, packed, E, O, Wout):
    """Returns (p, y) like MoENet.forward: p (B, E), y (E, B, O)."""
    slab = _moe_call(x, packed, E, O, Wout)
    B = x.shape[0]
    EO = E * O
    p = slab[:, EO:EO + E]
    # layout plumbing only (kept to preserve torch.stack's (E, B, O) semantics)
    y = slab[:, :EO].reshape(B, E, O).transpose(1, 0, 2)
    return p, y


# ---------------------------------------------------------------------------
# Deterministic parameter construction (synthetic, no checkpoint).
# ---------------------------------------------------------------------------
def init_params(key, D, H, E, O):
    ks = jax.random.split(key, 8)
    scale = 0.1
    cw1 = scale * jax.random.normal(ks[0], (D, H), jnp.float32)
    cb1 = scale * jax.random.normal(ks[1], (1, H), jnp.float32)
    cw2 = scale * jax.random.normal(ks[2], (H, E), jnp.float32)
    cb2 = scale * jax.random.normal(ks[3], (1, E), jnp.float32)
    ew1 = scale * jax.random.normal(ks[4], (E, D, H), jnp.float32)
    eb1 = scale * jax.random.normal(ks[5], (E, 1, H), jnp.float32)
    ew2 = scale * jax.random.normal(ks[6], (E, H, O), jnp.float32)
    eb2 = scale * jax.random.normal(ks[7], (E, 1, O), jnp.float32)
    return (cw1, cb1, cw2, cb2), (ew1, eb1, ew2, eb2)


def _reference(x, clus_params, expert_params, round_bf16=False):
    """Pure-JAX reference.  round_bf16=True mirrors the kernel's bf16 MXU inputs
    (f32 accumulation) for a tight numerical comparison."""
    def r(a):
        return a.astype(jnp.bfloat16).astype(jnp.float32) if round_bf16 else a
    cw1, cb1, cw2, cb2 = clus_params
    xr = r(x)
    hc = _leaky_relu(xr @ r(cw1) + cb1)
    logits = r(hc) @ r(cw2) + cb2
    p = jax.nn.softmax(logits, axis=1)
    ew1, eb1, ew2, eb2 = expert_params
    h = _leaky_relu(jnp.einsum("bd,edh->ebh", xr, r(ew1)) + eb1)
    y = jnp.einsum("ebh,eho->ebo", r(h), r(ew2)) + eb2
    return p, y


if __name__ == "__main__":
    B, D, H, E, O = 8, 16, 32, 4, 8   # batch, in-dim, hidden, num experts, out-dim
    key = jax.random.PRNGKey(0)
    kx, kp = jax.random.split(key)
    x = jax.random.normal(kx, (B, D), jnp.float32)
    clus_params, expert_params = init_params(kp, D, H, E, O)

    packed, (E_, O_, Wout) = pack_params(clus_params, expert_params)
    p, y = moe_forward(x, packed, E_, O_, Wout)
    p = jax.block_until_ready(p)
    y = jax.block_until_ready(y)

    assert p.shape == (B, E) and y.shape == (E, B, O)

    # Tight check against a reference using the same bf16-rounded matmul inputs.
    p_bf, y_bf = _reference(x, clus_params, expert_params, round_bf16=True)
    assert jnp.allclose(p, p_bf, atol=1e-3), "classifier mismatch (bf16-matched ref)"
    assert jnp.allclose(y, y_bf, atol=1e-3), "expert mismatch (bf16-matched ref)"

    # Loose semantic sanity check against the full-f32 reference
    # (difference is only the bf16 rounding of MXU inputs).
    p_f32, y_f32 = _reference(x, clus_params, expert_params, round_bf16=False)
    assert jnp.allclose(p, p_f32, atol=2e-2), "classifier drifted from f32 reference"
    assert jnp.allclose(y, y_f32, atol=5e-2), "expert drifted from f32 reference"
    # rows of p sum to 1 exactly-ish (exact divide in kernel)
    assert jnp.allclose(jnp.sum(p, axis=1), jnp.ones((B,), jnp.float32), atol=1e-5)

    print("KERNEL_OK")
</pallas_src>

<mosaic_0001>
module attributes {stable_mosaic.version = 11 : i64} {
  func.func @moe_kernel(%arg0: memref<8x16xf32, #tpu.memory_space<vmem>>, %arg1: memref<16x160xbf16, #tpu.memory_space<vmem>>, %arg2: memref<1x160xf32, #tpu.memory_space<vmem>>, %arg3: memref<160x128xbf16, #tpu.memory_space<vmem>>, %arg4: memref<1x128xf32, #tpu.memory_space<vmem>>, %arg5: memref<8x128xf32, #tpu.memory_space<vmem>>) attributes {dimension_semantics = [], scalar_prefetch = 0 : i64, scratch_operands = 0 : i64, tpu.core_type = #tpu.core_type<tc>} {
    %c0 = arith.constant 0 : index
    %c0_0 = arith.constant 0 : index
    %0 = vector.load %arg0[%c0, %c0_0] : memref<8x16xf32, #tpu.memory_space<vmem>>, vector<8x16xf32>
    %1 = arith.truncf %0 : vector<8x16xf32> to vector<8x16xbf16>
    %c0_1 = arith.constant 0 : index
    %c0_2 = arith.constant 0 : index
    %2 = vector.load %arg1[%c0_1, %c0_2] : memref<16x160xbf16, #tpu.memory_space<vmem>>, vector<16x160xbf16>
    %cst = arith.constant dense<0.000000e+00> : vector<8x160xf32>
    %3 = tpu.matmul %1, %2, %cst {dimension_numbers = #tpu.dot_dimension_numbers<[1], [0], [0], [1], [0, 0, 1, 1], [], []>} : vector<8x16xbf16>, vector<16x160xbf16>, vector<8x160xf32> -> vector<8x160xf32>
    %c0_3 = arith.constant 0 : index
    %c0_4 = arith.constant 0 : index
    %4 = vector.load %arg2[%c0_3, %c0_4] : memref<1x160xf32, #tpu.memory_space<vmem>>, vector<1x160xf32>
    %5 = vector.broadcast %4 : vector<1x160xf32> to vector<8x160xf32>
    %6 = arith.addf %3, %5 : vector<8x160xf32>
    %cst_5 = arith.constant 0.00999999977 : f32
    %7 = vector.broadcast %cst_5 : f32 to vector<8x160xf32>
    %8 = arith.mulf %7, %6 : vector<8x160xf32>
    %9 = arith.maximumf %6, %8 : vector<8x160xf32>
    %10 = arith.truncf %9 : vector<8x160xf32> to vector<8x160xbf16>
    %c0_6 = arith.constant 0 : index
    %c0_7 = arith.constant 0 : index
    %11 = vector.load %arg3[%c0_6, %c0_7] : memref<160x128xbf16, #tpu.memory_space<vmem>>, vector<160x128xbf16>
    %cst_8 = arith.constant dense<0.000000e+00> : vector<8x128xf32>
    %12 = tpu.matmul %10, %11, %cst_8 {dimension_numbers = #tpu.dot_dimension_numbers<[1], [0], [0], [1], [0, 0, 1, 1], [], []>} : vector<8x160xbf16>, vector<160x128xbf16>, vector<8x128xf32> -> vector<8x128xf32>
    %c0_9 = arith.constant 0 : index
    %c0_10 = arith.constant 0 : index
    %13 = vector.load %arg4[%c0_9, %c0_10] : memref<1x128xf32, #tpu.memory_space<vmem>>, vector<1x128xf32>
    %14 = vector.broadcast %13 : vector<1x128xf32> to vector<8x128xf32>
    %15 = arith.addf %12, %14 : vector<8x128xf32>
    %16 = tpu.iota {dimensions = array<i32: 1>} : vector<8x128xi32>
    %c32_i32 = arith.constant 32 : i32
    %17 = vector.broadcast %c32_i32 : i32 to vector<8x128xi32>
    %18 = arith.cmpi sge, %16, %17 : vector<8x128xi32>
    %c36_i32 = arith.constant 36 : i32
    %19 = vector.broadcast %c36_i32 : i32 to vector<8x128xi32>
    %20 = arith.cmpi slt, %16, %19 : vector<8x128xi32>
    %21 = arith.andi %18, %20 : vector<8x128xi1>
    %cst_11 = arith.constant 0xFF800000 : f32
    %22 = vector.broadcast %cst_11 : f32 to vector<8x128xf32>
    %23 = arith.select %21, %15, %22 : vector<8x128xi1>, vector<8x128xf32>
    %cst_12 = arith.constant dense<0xFF800000> : vector<8xf32>
    %24 = vector.multi_reduction <maximumf>, %23, %cst_12 [1] : vector<8x128xf32> to vector<8xf32>
    %25 = vector.shape_cast %24 : vector<8xf32> to vector<8x1xf32>
    %26 = vector.broadcast %25 : vector<8x1xf32> to vector<8x128xf32>
    %27 = arith.subf %23, %26 : vector<8x128xf32>
    %28 = math.exp %27 : vector<8x128xf32>
    %cst_13 = arith.constant dense<0.000000e+00> : vector<8xf32>
    %29 = vector.multi_reduction <add>, %28, %cst_13 [1] : vector<8x128xf32> to vector<8xf32>
    %30 = vector.shape_cast %29 : vector<8xf32> to vector<8x1xf32>
    %31 = vector.broadcast %30 : vector<8x1xf32> to vector<8x128xf32>
    %32 = arith.divf %28, %31 : vector<8x128xf32>
    %33 = arith.select %21, %32, %15 : vector<8x128xi1>, vector<8x128xf32>
    %c0_14 = arith.constant 0 : index
    %c0_15 = arith.constant 0 : index
    %34 = vector.load %arg5[%c0_14, %c0_15] : memref<8x128xf32, #tpu.memory_space<vmem>>, vector<8x128xf32>
    tpu.vector_store %arg5[%c0_14, %c0_15], %33 {strides = array<i32>} : memref<8x128xf32, #tpu.memory_space<vmem>>, vector<8x128xf32>,
    return
  }
}

</mosaic_0001>

<bundles_post_ra>
// kernel: _moe_call.1
= control target key start
LH: loop header
LB: loop body
LE: loop exit
PB: predicated region body
PF: predicated region fallthrough
CT: control target
= control target key end

     0   :  { %10 = vsyncpa [#allocation3], 0  ;;  %s570_s0 = inlined_call_operand.hbm [shape: f32[8,16], index: 0, kind: input, shape index: {}]   ;;  %s571_s1 = inlined_call_operand.hbm [shape: bf16[16,160], index: 1, kind: input, shape index: {}]   ;;  %s572_s2 = inlined_call_operand.hbm [shape: f32[1,160], index: 2, kind: input, shape index: {}]   ;;  %s573_s3 = inlined_call_operand.hbm [shape: bf16[160,128], index: 3, kind: input, shape index: {}]   ;;  %s574_s4 = inlined_call_operand.vmem [shape: f32[1,128], index: 4, kind: input, shape index: {}]   ;;  %s575_s5 = inlined_call_operand.hbm [shape: f32[8,128], index: 5, kind: output, shape index: {}]  }
   0x1   :  { %11 = vsyncpa [#allocation6], 0 }
   0x2   :  { %12 = vsyncpa [#allocation9], 0  ;;  %s29_s20 = sshll.u32 %s571_s1, 4  ;;  %s30_s20 = int_to_ptr.hbm [resolvable:$true] %s29_s20 }
   0x3   :  { %13 = vsyncpa [#allocation4], 0  ;;  %s505_s21 = smov [#allocation5]   ;;  %s19_s25 = sshll.u32 %s570_s0, 4  ;;  %s20_s25 = int_to_ptr.hbm [resolvable:$true] %s19_s25 }
   0x4   :  { %s31_s22 = sshll.u32 %s505_s21, 4  ;;  %s506_s26 = smov 128   ;;  %s32_s22 = int_to_ptr.vmem [resolvable:$true] %s31_s22 }
   0x5   :  { %s507_s27 = smov 8   ;;  %s508_s28 = smov [#allocation2]  }
   0x6   :  { %37 = dma.hbm_to_vmem [thread:$0]  %s30_s20, 256, %s32_s22, [#allocation6], %s506_s26, %s506_s26, %s507_s27  }
   0x7   :  { %s21_s29 = sshll.u32 %s508_s28, 4  ;;  %s43_s7 = sshll.u32 %s572_s2, 4  ;;  %s22_s29 = int_to_ptr.vmem [resolvable:$true] %s21_s29  ;;  %s44_s7 = int_to_ptr.hbm [resolvable:$true] %s43_s7 }
   0x8   :  { %24 = dma.hbm_to_vmem [thread:$0]  %s20_s25, 128, %s22_s29, [#allocation3]  }
   0x9   :  { %s53_s9 = sshll.u32 %s573_s3, 4  ;;  %s509_s10 = smov [#allocation7]   ;;  %s54_s9 = int_to_ptr.hbm [resolvable:$true] %s53_s9 }
   0xa   :  { %s45_s11 = sshll.u32 %s509_s10, 4  ;;  %s510_s0 = smov [#allocation8]   ;;  %s46_s11 = int_to_ptr.vmem [resolvable:$true] %s45_s11 }
   0xb   :  { %48 = dma.hbm_to_vmem [thread:$0]  %s44_s7, 32, %s46_s11, [#allocation6]  }
   0xc   :  { %s55_s12 = sshll.u32 %s510_s0, 4  ;;  %s511_s13 = smov 64   ;;  %s56_s12 = int_to_ptr.vmem [resolvable:$true] %s55_s12 }
   0xd   :  { %s512_s14 = smov 4  }
   0xe   :  { %61 = dma.hbm_to_vmem [thread:$0]  %s54_s9, 1280, %s56_s12, [#allocation9], %s511_s13, %s511_s13, %s512_s14  }
   0xf   :  { %497 = dma.done.wait [#allocation3], 128  }
  0x10   :  { %498 = vsyncadd [#allocation3], 4294967168 }
  0x11   :  { %499 = dma.done.wait [#allocation6], 288  }
  0x12   :  { %500 = vsyncadd [#allocation6], 4294967008 }
  0x13   :  { %501 = dma.done.wait [#allocation9], 1280  }
  0x14   :  { %502 = vsyncadd [#allocation9], 4294966016  ;;  %v302_v0 = vld [vmem:[#allocation5] sm:$0xf]  ;;  %v352_v1 = vld [vmem:[#allocation5 + $0x4] sm:$0xf0]  ;;  %v251_v33 = vlaneseq }
  0x15   :  { %v351_v2 = vld [vmem:[#allocation5 + $0x4] sm:$0xf]  ;;  %v303_v3 = vor.u32 %v352_v1, %v302_v0  ;;  %v304_v4 = vld [vmem:[#allocation5 + $0x8] sm:$0xf0]  ;;  %v81_v5 = vld [vmem:[#allocation2] sm:$0xff]  ;;  %vm101_vm0 = vcmask 130048  }
  0x16   :  { %v360_v6 = vld [vmem:[#allocation8 + $0x38] sm:$0xff]  ;;  %v307_v7 = vor.u32 %v351_v2, %v304_v4  ;;  %v82_v8 = vpack.c.bf16 %v81_v5, %v81_v5  ;;  %v359_v9 = vld [vmem:[#allocation8 + $0x30] sm:$0xff]  ;;  %v358_v10 = vld [vmem:[#allocation8 + $0x28] sm:$0xff]  ;;  %vm221_vm1 = vcmask 261120   ;;  %v252_v34 = vand.u32 127, %v251_v33  ;;  %s288_s18 = sshll.u32 %s575_s5, 4  ;;  %s289_s18 = int_to_ptr.hbm [resolvable:$true] %s288_s18 }
  0x17   :  { %112 = vmatpush.bf16.msra.mxu0 %v303_v3  ;;  %225 = vmatpush.bf16.msra.mxu2 %v360_v6  ;;  %v357_v11 = vld [vmem:[#allocation8 + $0x20] sm:$0xff]  ;;  %v356_v12 = vld [vmem:[#allocation8 + $0x18] sm:$0xff]  ;;  %v355_v13 = vld [vmem:[#allocation8 + $0x10] sm:$0xff] }
  0x18   :  { %125 = vmatpush.bf16.msra.mxu1 %v307_v7  ;;  %v354_v14 = vld [vmem:[#allocation8 + $0x8] sm:$0xff]  ;;  %v353_v16 = vld [vmem:[#allocation8] sm:$0xff]  ;;  %v85_v18 = vld [vmem:[#allocation7] sm:$0x3]  ;;  %vm253_vm2 = vcmp.ge.s32.totalorder %v252_v34, 32  ;;  %vm254_vm3 = vcmp.lt.s32.totalorder %v252_v34, 36 }
  0x19   :  { %v362_v15 = vld [vmem:[#allocation8 + $0x48] sm:$0xff]  ;;  %v361_v17 = vld [vmem:[#allocation8 + $0x40] sm:$0xff]  ;;  %v87_v19 = vperm.slane %v85_v18, 0  ;;  %v88_v20 = vperm.slane %v85_v18, 1  ;;  %vm559_vm4 = vmand %vm253_vm2, %vm254_vm3 }
  0x1a   :  { %308 = vmatmul.msk.bf16.vlgmr.msra.gmra.mxu0 %vm101_vm0, %v82_v8  ;;  %244 = vmatpush.bf16.msra.mxu3 %v362_v15  ;;  %v372_v35 = vld [vmem:[%s574_s4] ss:$0 sm:$0xff]  ;;  %s513_s4 = smov [#allocation10]  }
  0x1b   :  { %309 = vmatmul.msk.bf16.vlgmr.msra.gmra.mxu1 %vm101_vm0, %v82_v8  ;;  %226 = vmatpush.bf16.msra.mxu2 %v359_v9  ;;  %s286_s15 = sshll.u32 %s513_s4, 4  ;;  %s287_s15 = int_to_ptr.vmem [resolvable:$true] %s286_s15 }
  0x1e   :  { %245 = vmatpush.bf16.msra.mxu3 %v361_v17 }
  0x1f   :  { %227 = vmatpush.bf16.msra.mxu2 %v358_v10 }
  0x23   :  { %228 = vmatpush.bf16.msra.mxu2 %v357_v11 }
  0x27   :  { %229 = vmatpush.bf16.msra.mxu2 %v356_v12 }
  0x2b   :  { %230 = vmatpush.bf16.msra.mxu2 %v355_v13 }
  0x2f   :  { %231 = vmatpush.bf16.msra.mxu2 %v354_v14 }
  0x33   :  { %232 = vmatpush.bf16.msra.mxu2 %v353_v16 }
  0x97   :  { %v114_v21 = vpop.f32.mrf.mxu0 }
  0x98   :  { %v115_v22 = vadd.f32 %v114_v21, %v87_v19  ;;  %v127_v23 = vpop.f32.mrf.mxu1 }
  0x99   :  { %v128_v24 = vadd.f32 %v127_v23, %v88_v20 }
  0x9a   :  { %v131_v25 = vmul.f32 0.01, %v115_v22 }
  0x9b   :  { %v132_v26 = vmul.f32 0.01, %v128_v24 }
  0x9c   :  { %v133_v27 = vmax.f32 %v115_v22, %v131_v25 }
  0x9d   :  { %v134_v28 = vmax.f32 %v128_v24, %v132_v26 }
  0x9e   :  { %v135_v29 = vpack.c.bf16 %v133_v27, %v133_v27 }
  0x9f   :  { %v136_v30 = vpack.c.bf16 %v134_v28, %v134_v28  ;;  %v116_v31 = vpop.f32.mrf.mxu0 }
  0xa0   :  { %v129_v32 = vpop.f32.mrf.mxu1  ;;  %233 = vmatmul.bf16.vlgmr.msra.gmra.mxu2 %v135_v29 }
  0xa1   :  { %350 = vmatmul.msk.bf16.vlgmr.msra.gmra.mxu3 %vm221_vm1, %v136_v30 }
 0x123   :  { %v234_v36 = vpop.f32.mrf.mxu2 }
 0x124   :  { %v235_v37 = vadd.f32 %v372_v35, %v234_v36  ;;  %v247_v38 = vpop.f32.mrf.mxu3 }
 0x126   :  { %v248_v40 = vadd.f32 %v247_v38, %v235_v37 }
 0x128   :  { %v256_v41 = vsel %vm559_vm4, %v248_v40, -inf }
 0x129   :  { %257 = vmax.xlane.f32.xlu0 %v256_v41 }
 0x12b   :  { %v236_v42 = vpop.f32.mrf.mxu2 }
 0x12c   :  { %v249_v43 = vpop.f32.mrf.mxu3 }
 0x19c   :  { %v258_v44 = vpop.xlane.xlu0 %257 }
 0x19d   :  { %v259_v45 = vsub.f32 %v256_v41, %v258_v44 }
 0x19f   :  { %v260_v46 = vmul.f32 1.442695, %v259_v45 }
 0x1a1   :  { %373 = vpow2.f32 %v260_v46 }
 0x1a7   :  { %v374_v47 = vpop.eup %373 }
 0x1a8   :  { %262 = vadd.xlane.f32.xlu0 %v374_v47 }
 0x21b   :  { %v263_v48 = vpop.xlane.xlu0 %262 }
 0x21c   :  { %375 = vrcp.f32 %v263_v48  ;;  %v275_v52 = vand.u32 2147483648, %v263_v48  ;;  %v273_v54 = vand.u32 2147483647, %v263_v48  ;;  %vm269_vm6 = vweird.f32 %v263_v48 }
 0x21e   :  { %v276_v56 = vor.u32 1.1754944e-38, %v275_v52  ;;  %vm274_vm8 = vcmp.eq.f32.partialorder %v273_v54, 8.507059e+37 }
 0x222   :  { %v376_v49 = vpop.eup %375 }
 0x223   :  { %v265_v50 = vmul.f32 %v376_v49, %v263_v48  ;;  %vm270_vm5 = vweird.f32 %v376_v49 }
 0x224   :  { %vm271_vm7 = vmor %vm269_vm6, %vm270_vm5 }
 0x225   :  { %v266_v51 = vsub.f32 1.0, %v265_v50 }
 0x227   :  { %v267_v53 = vmul.f32 %v376_v49, %v266_v51 }
 0x229   :  { %v268_v55 = vadd.f32 %v376_v49, %v267_v53 }
 0x22b   :  { %v272_v57 = vsel %vm271_vm7, %v376_v49, %v268_v55 }
 0x22c   :  { %v277_v58 = vsel %vm274_vm8, %v276_v56, %v272_v57 }
 0x22d   :  { %v278_v59 = vmul.f32 %v374_v47, %v277_v58 }
 0x22f   :  { %v279_v60 = vsel %vm559_vm4, %v278_v59, %v248_v40 }
 0x230   :  { %280 = vst [vmem:[#allocation10] sm:$0xff] %v279_v60 }
 0x231   :  { %291 = dma.vmem_to_hbm [thread:$0]  %s287_s15, 128, %s289_s18, [#allocation4]  }
 0x232   :  { %503 = dma.done.wait [#allocation4], 128  }
 0x233   :  { %504 = vsyncadd [#allocation4], 4294967168 }
 0x234   :  { %296 = vsyncpa [#allocation3], 1 }
 0x235   :  { %297 = vsyncpa [#allocation6], 1 }
 0x236   :  { %298 = vsyncpa [#allocation9], 1 }
 0x237   :  { %299 = vsyncpa [#allocation4], 1 }

</bundles_post_ra>
